<compile_context>
chip_gen: v7x
topology: tpu7x:2x2x1
jax: 0.10.0
libtpu: 0.0.40
codegen_flags: <defaults>
</compile_context>

<pallas_src>
import jax
import jax.numpy as jnp
from jax.experimental import pallas as pl
from jax.experimental.pallas import tpu as pltpu


def _make_partial_sums_kernel(tile_rows, c_cols, valid_rows, need_mask):
    """Per-block partial column sums of both inputs, written lane-dense."""

    def kernel(x_ref, t_ref, o_ref):
        # x_ref / t_ref: (tile_rows, c_cols) VMEM tiles in the original dtype.
        # o_ref:         (1, 1, 2*c_cols) f32 partial column sums.
        xv = x_ref[...].astype(jnp.float32)
        tv = t_ref[...].astype(jnp.float32)
        if need_mask:
            # Ragged last block: rows past `valid_rows` hold undefined data
            # (the DMA is clamped at the array edge) — zero them out.
            row = jax.lax.broadcasted_iota(jnp.int32, (tile_rows, c_cols), 0)
            row = row + pl.program_id(0) * tile_rows
            keep = row < valid_rows
            xv = jnp.where(keep, xv, 0.0)
            tv = jnp.where(keep, tv, 0.0)
        xs = jnp.sum(xv, axis=0, keepdims=True)              # (1, C)
        ts = jnp.sum(tv, axis=0, keepdims=True)              # (1, C)
        o_ref[...] = jnp.concatenate([xs, ts], axis=-1)[None]  # (1, 1, 2C)

    return kernel


def _finalize(s_in, s_tg, smooth):
    intersection = s_in * s_tg            # matches PyTorch: sum() * sum()
    union = s_in + s_tg                   # matches PyTorch: sum() + sum()
    iou = (intersection + smooth) / (union + smooth)
    return (jnp.float32(1.0) - iou).astype(jnp.float32)


# Below this element count a fused XLA reduce beats kernel launch overhead.
_SMALL_INPUT_ELEMS = 1 << 20


def iou_loss(inputs, targets, smooth=1e-6, *, min_pallas_elems=_SMALL_INPUT_ELEMS):
    """Pallas implementation of IoULoss.forward. Returns a scalar f32."""
    x = inputs.reshape(-1)
    t = targets.reshape(-1)
    n = x.shape[0]

    # Lane-dense column count that divides n exactly (so the 2-D view is a
    # free bitcast) and leaves at least 8 sublane rows.
    c_cols = None
    for c in (512, 256, 128):
        if n % c == 0 and n // c >= 8:
            c_cols = c
            break

    if n < min_pallas_elems or c_cols is None:
        # Fast path (tiny tensors) / fallback (n not expressible as a free
        # (rows, 128k) view): a plain XLA reduce is at/near roofline here.
        return _finalize(jnp.sum(x.astype(jnp.float32)),
                         jnp.sum(t.astype(jnp.float32)), smooth)

    rows = n // c_cols
    x2 = x.reshape(rows, c_cols)   # free: rows * c_cols == n, contiguous
    t2 = t.reshape(rows, c_cols)

    # Tile: ~1M elements (~4 MiB f32) per input block, capped so the grid has
    # >= 2 steps (lets the "parallel" axis shard across both v7x TensorCores).
    target_rows = max(8, ((1 << 20) // c_cols) // 8 * 8)
    cap = max(8, (rows // 2) // 8 * 8) if rows >= 16 else 8
    tile_rows = min(target_rows, cap)
    num_blocks = pl.cdiv(rows, tile_rows)
    need_mask = (rows % tile_rows) != 0    # ragged last block → mask, never pad

    kernel = _make_partial_sums_kernel(tile_rows, c_cols, rows, need_mask)

    bytes_in = n * (x2.dtype.itemsize + t2.dtype.itemsize)
    cost = pl.CostEstimate(
        flops=2 * n,
        transcendentals=0,
        bytes_accessed=bytes_in + num_blocks * 2 * c_cols * 4,
    )

    partials = pl.pallas_call(
        kernel,
        out_shape=jax.ShapeDtypeStruct((num_blocks, 1, 2 * c_cols), jnp.float32),
        grid_spec=pltpu.PrefetchScalarGridSpec(
            num_scalar_prefetch=0,
            grid=(num_blocks,),
            in_specs=[
                pl.BlockSpec((tile_rows, c_cols), lambda i: (i, 0)),
                pl.BlockSpec((tile_rows, c_cols), lambda i: (i, 0)),
            ],
            out_specs=pl.BlockSpec((1, 1, 2 * c_cols), lambda i: (i, 0, 0)),
        ),
        compiler_params=pltpu.CompilerParams(
            dimension_semantics=("parallel",),
            vmem_limit_bytes=40 * 1024 * 1024,
        ),
        cost_estimate=cost,
    )(x2, t2)

    # Tiny epilogue in plain JAX: (num_blocks, 2, c_cols) f32 → two scalars.
    sums = jnp.sum(partials.reshape(num_blocks, 2, c_cols), axis=(0, 2))
    return _finalize(sums[0], sums[1], smooth)


def iou_loss_ref(inputs, targets, smooth=1e-6):
    x = inputs.reshape(inputs.shape[0], -1).astype(jnp.float32)
    t = targets.reshape(targets.shape[0], -1).astype(jnp.float32)
    inter = x.sum() * t.sum()
    union = x.sum() + t.sum()
    return 1.0 - (inter + smooth) / (union + smooth)


if __name__ == "__main__":
    key = jax.random.PRNGKey(0)
    k1, k2, k3, k4 = jax.random.split(key, 4)

    # Test 1: small NCHW-shaped inputs consistent with a segmentation loss.
    # Force the Pallas path (min_pallas_elems=0) so the kernel itself runs.
    a1 = jax.nn.sigmoid(jax.random.normal(k1, (2, 4, 16, 16), jnp.float32))
    b1 = (jax.random.uniform(k2, (2, 4, 16, 16)) > 0.5).astype(jnp.float32)
    out1 = jax.block_until_ready(iou_loss(a1, b1, min_pallas_elems=0))
    ref1 = jax.block_until_ready(iou_loss_ref(a1, b1))
    assert jnp.allclose(out1, ref1, rtol=1e-5, atol=1e-6), (out1, ref1)

    # Test 2: row count not a multiple of the tile → exercises the in-kernel
    # ragged-last-block masking path (replaces the old jnp.pad).
    a2 = jax.nn.sigmoid(jax.random.normal(k3, (2, 4, 16, 24), jnp.float32))
    b2 = (jax.random.uniform(k4, (2, 4, 16, 24)) > 0.5).astype(jnp.float32)
    out2 = jax.block_until_ready(iou_loss(a2, b2, min_pallas_elems=0))
    ref2 = jax.block_until_ready(iou_loss_ref(a2, b2))
    assert jnp.allclose(out2, ref2, rtol=1e-5, atol=1e-6), (out2, ref2)

    # Test 3: default small-input fast path (pure XLA reduce, no pallas_call).
    out3 = jax.block_until_ready(iou_loss(a1, b1))
    assert jnp.allclose(out3, ref1, rtol=1e-5, atol=1e-6), (out3, ref1)

    print("KERNEL_OK")
</pallas_src>

<mosaic_0001>
module attributes {stable_mosaic.version = 11 : i64} {
  func.func @kernel(%arg0: i32, %arg1: memref<8x256xf32, #tpu.memory_space<vmem>>, %arg2: memref<8x256xf32, #tpu.memory_space<vmem>>, %arg3: memref<1x1x512xf32, #tpu.memory_space<vmem>>) attributes {dimension_semantics = [#tpu.dimension_semantics<parallel>], iteration_bounds = array<i64: 1>, scalar_prefetch = 0 : i64, scratch_operands = 0 : i64, tpu.core_type = #tpu.core_type<tc>, window_params = [{transform_indices = @transform_0, window_bounds = array<i64: 8, 256>}, {transform_indices = @transform_1, window_bounds = array<i64: 8, 256>}, {transform_indices = @transform_2, window_bounds = array<i64: 1, 1, 512>}]} {
    %c0 = arith.constant 0 : index
    %c0_0 = arith.constant 0 : index
    %0 = vector.load %arg1[%c0, %c0_0] : memref<8x256xf32, #tpu.memory_space<vmem>>, vector<8x256xf32>
    %c0_1 = arith.constant 0 : index
    %c0_2 = arith.constant 0 : index
    %1 = vector.load %arg2[%c0_1, %c0_2] : memref<8x256xf32, #tpu.memory_space<vmem>>, vector<8x256xf32>
    %cst = arith.constant dense<0.000000e+00> : vector<256xf32>
    %2 = vector.multi_reduction <add>, %0, %cst [0] : vector<8x256xf32> to vector<256xf32>
    %3 = vector.shape_cast %2 : vector<256xf32> to vector<1x256xf32>
    %cst_3 = arith.constant dense<0.000000e+00> : vector<256xf32>
    %4 = vector.multi_reduction <add>, %1, %cst_3 [0] : vector<8x256xf32> to vector<256xf32>
    %5 = vector.shape_cast %4 : vector<256xf32> to vector<1x256xf32>
    %6 = tpu.concatenate %3, %5 in 1 : vector<1x256xf32>, vector<1x256xf32> -> vector<1x512xf32>
    %7 = vector.shape_cast %6 : vector<1x512xf32> to vector<1x1x512xf32>
    %c0_4 = arith.constant 0 : index
    %c0_5 = arith.constant 0 : index
    %c0_6 = arith.constant 0 : index
    %8 = vector.load %arg3[%c0_4, %c0_5, %c0_6] : memref<1x1x512xf32, #tpu.memory_space<vmem>>, vector<1x1x512xf32>
    tpu.vector_store %arg3[%c0_4, %c0_5, %c0_6], %7 {strides = array<i32>} : memref<1x1x512xf32, #tpu.memory_space<vmem>>, vector<1x1x512xf32>,
    return
  }
  func.func @transform_0(%arg0: i32) -> (i32, i32) {
    %c0_i32 = arith.constant 0 : i32
    %c0_i32_0 = arith.constant 0 : i32
    return %arg0, %c0_i32 : i32, i32
  }
  func.func @transform_1(%arg0: i32) -> (i32, i32) {
    %c0_i32 = arith.constant 0 : i32
    %c0_i32_0 = arith.constant 0 : i32
    return %arg0, %c0_i32 : i32, i32
  }
  func.func @transform_2(%arg0: i32) -> (i32, i32, i32) {
    %c0_i32 = arith.constant 0 : i32
    %c0_i32_0 = arith.constant 0 : i32
    %c0_i32_1 = arith.constant 0 : i32
    return %arg0, %c0_i32, %c0_i32_0 : i32, i32, i32
  }
}

</mosaic_0001>

<bundles_post_ra>
// kernel: tpu_custom_call.1
= control target key start
LH: loop header
LB: loop body
LE: loop exit
PB: predicated region body
PF: predicated region fallthrough
CT: control target
= control target key end

     0   :  { %7 = vsyncpa [#allocation3], 0  ;;  %s245_s0 = inlined_call_operand.hbm [shape: f32[8,256], index: 0, kind: input, shape index: {}]   ;;  %s246_s1 = inlined_call_operand.hbm [shape: f32[8,256], index: 1, kind: input, shape index: {}]   ;;  %s247_s2 = inlined_call_operand.hbm [shape: f32[1,1,512], index: 2, kind: output, shape index: {}]  }
   0x1   :  { %8 = vsyncpa [#allocation6], 0 }
   0x2   :  { %9 = vsyncpa [#allocation4], 0  ;;  %s190_s9 = smov [#allocation2]   ;;  %s191_s11 = smov [#allocation5]  }
   0x3   :  { %s16_s10 = sshll.u32 %s190_s9, 4  ;;  %s26_s12 = sshll.u32 %s191_s11, 4  ;;  %s17_s10 = int_to_ptr.vmem [resolvable:$true] %s16_s10  ;;  %s27_s12 = int_to_ptr.vmem [resolvable:$true] %s26_s12 }
   0x4   :  { %s118_s15 = scalar_lea.hbm %s245_s0, 256 }
   0x5   :  { %p119_p0 = scmp.ne.s32.totalorder %s245_s0, %s118_s15  ;;  %p122_p1 = scmp.lt.u32.totalorder %s118_s15, %s245_s0 }
   0x7   :  { %p124_p2 = pnand %p122_p1, %p119_p0 }
   0x9   :  { %127 = shalt.err (!%p124_p2)
}
   0xa   :  { %s128_s20 = scalar_lea.vmem %s17_s10, 256  ;;  %p133_p4 = scmp.lt.s32.totalorder %s17_s10, %s17_s10 }
   0xb   :  { %p129_p3 = scmp.ne.s32.totalorder %s17_s10, %s128_s20  ;;  %p134_p5 = scmp.lt.s32.totalorder %s128_s20, %s128_s20 }
   0xd   :  { %p135_p6 = por %p134_p5, %p133_p4 }
   0xf   :  { %p136_p7 = pnand %p135_p6, %p129_p3 }
  0x11   :  { %139 = shalt.err (!%p136_p7)
}
  0x12   :  { %19 = dma.hbm_to_vmem [thread:$0]  %s245_s0, 256, %s17_s10, [#allocation3]  }
  0x13   :  { %s140_s25 = scalar_lea.hbm %s246_s1, 256 }
  0x14   :  { %p141_p8 = scmp.ne.s32.totalorder %s246_s1, %s140_s25  ;;  %p144_p9 = scmp.lt.u32.totalorder %s140_s25, %s246_s1 }
  0x16   :  { %p146_p10 = pnand %p144_p9, %p141_p8 }
  0x18   :  { %149 = shalt.err (!%p146_p10)
}
  0x19   :  { %s150_s30 = scalar_lea.vmem %s27_s12, 256  ;;  %p155_p12 = scmp.lt.s32.totalorder %s27_s12, %s27_s12 }
  0x1a   :  { %p151_p11 = scmp.ne.s32.totalorder %s27_s12, %s150_s30  ;;  %p156_p13 = scmp.lt.s32.totalorder %s150_s30, %s150_s30 }
  0x1c   :  { %p157_p0 = por %p156_p13, %p155_p12 }
  0x1e   :  { %p158_p1 = pnand %p157_p0, %p151_p11 }
  0x20   :  { %161 = shalt.err (!%p158_p1)
}
  0x21   :  { %29 = dma.hbm_to_vmem [thread:$0]  %s246_s1, 256, %s27_s12, [#allocation6]  }
  0x22   :  { %184 = dma.done.wait [#allocation3], 256  }
  0x23   :  { %185 = vsyncadd [#allocation3], 4294967040 }
  0x24   :  { %186 = dma.done.wait [#allocation6], 256  }
  0x25   :  { %187 = vsyncadd [#allocation6], 4294967040  ;;  %v36_v0 = vld [vmem:[#allocation2] sm:$0xff]  ;;  %v37_v1 = vld [vmem:[#allocation2 + $0x8] sm:$0xff]  ;;  %v73_v8 = vlaneseq  ;;  %v192_v12 = vmov 1966171168  }
  0x26   :  { %v38_v2 = vld [vmem:[#allocation5] sm:$0xff]  ;;  %v39_v3 = vld [vmem:[#allocation5 + $0x8] sm:$0xff]  ;;  %v40_v4 = vrot.slane %v36_v0, 4  ;;  %v46_v5 = vrot.slane %v37_v1, 4  ;;  %v71_v13 = vunpack.c.l.s4 %v192_v12  ;;  %s193_s1 = smov [#allocation7]  }
  0x27   :  { %v52_v6 = vrot.slane %v38_v2, 4  ;;  %v58_v7 = vrot.slane %v39_v3, 4  ;;  %v74_v19 = vshrl.u32 %v73_v8, 7  ;;  %s104_s4 = sshll.u32 %s193_s1, 4  ;;  %vm95_vm0 = vcmp.lt.s32.totalorder %v73_v8, 512  ;;  %s105_s4 = int_to_ptr.vmem [resolvable:$true] %s104_s4 }
  0x28   :  { %v41_v9 = vadd.f32 %v40_v4, %v36_v0  ;;  %v47_v10 = vadd.f32 %v46_v5, %v37_v1  ;;  %v72_v23 = vunpack.c.0.s8 %v71_v13  ;;  %s162_s5 = scalar_lea.vmem %s105_s4, 64  ;;  %p167_p3 = scmp.lt.s32.totalorder %s105_s4, %s105_s4 }
  0x29   :  { %v53_v11 = vadd.f32 %v52_v6, %v38_v2  ;;  %v59_v14 = vadd.f32 %v58_v7, %v39_v3  ;;  %p163_p2 = scmp.ne.s32.totalorder %s105_s4, %s162_s5  ;;  %p168_p4 = scmp.lt.s32.totalorder %s162_s5, %s162_s5 }
  0x2a   :  { %v42_v15 = vrot.slane %v41_v9, 2  ;;  %v48_v16 = vrot.slane %v47_v10, 2  ;;  %v75_v32 = vsub.s32 %v72_v23, %v74_v19 }
  0x2b   :  { %v54_v17 = vrot.slane %v53_v11, 2  ;;  %v60_v18 = vrot.slane %v59_v14, 2  ;;  %p169_p5 = por %p168_p4, %p167_p3 }
  0x2c   :  { %v43_v20 = vadd.f32 %v42_v15, %v41_v9  ;;  %v49_v21 = vadd.f32 %v48_v16, %v47_v10 }
  0x2d   :  { %v55_v22 = vadd.f32 %v54_v17, %v53_v11  ;;  %v61_v24 = vadd.f32 %v60_v18, %v59_v14  ;;  %p170_p6 = pnand %p169_p5, %p163_p2 }
  0x2e   :  { %v44_v25 = vrot.slane %v43_v20, 1  ;;  %v50_v26 = vrot.slane %v49_v21, 1 }
  0x2f   :  { %v56_v27 = vrot.slane %v55_v22, 1  ;;  %v62_v28 = vrot.slane %v61_v24, 1 }
  0x30   :  { %v45_v29 = vadd.f32 %v44_v25, %v43_v20  ;;  %v51_v30 = vadd.f32 %v50_v26, %v49_v21 }
  0x31   :  { %v57_v31 = vadd.f32 %v56_v27, %v55_v22  ;;  %v63_v33 = vadd.f32 %v62_v28, %v61_v24 }
  0x32   :  { %v68_v34 = vcombine.low %v45_v29, %v51_v30 }
  0x33   :  { %v69_v35 = vcombine.low %v57_v31, %v63_v33 }
  0x34   :  { %v76_v36 = vrot.slane %v68_v34, %v75_v32 }
  0x35   :  { %v83_v37 = vrot.slane %v69_v35, %v75_v32 }
  0x37   :  { %v84_v38 = vcombine.low %v76_v36, %v83_v37 }
  0x39   :  { %v91_v39 = vrot.slane %v84_v38, %v75_v32 }
  0x3b   :  { %97 = vst.msk [vmem:[#allocation7] sm:$0xf] %vm95_vm0, %v91_v39 }
  0x3c   :  { %173 = shalt.err (!%p170_p6)
}
  0x3d   :  { %s174_s8 = scalar_lea.hbm %s247_s2, 64 }
  0x3e   :  { %p175_p7 = scmp.ne.s32.totalorder %s247_s2, %s174_s8  ;;  %p178_p8 = scmp.lt.u32.totalorder %s174_s8, %s247_s2 }
  0x40   :  { %p180_p9 = pnand %p178_p8, %p175_p7 }
  0x42   :  { %183 = shalt.err (!%p180_p9)
}
  0x43   :  { %107 = dma.vmem_to_hbm [thread:$0]  %s105_s4, 64, %s247_s2, [#allocation4]  }
  0x44   :  { %188 = dma.done.wait [#allocation4], 64  }
  0x45   :  { %189 = vsyncadd [#allocation4], 4294967232 }
  0x46   :  { %111 = vsyncpa [#allocation3], 1 }
  0x47   :  { %112 = vsyncpa [#allocation6], 1 }
  0x48   :  { %113 = vsyncpa [#allocation4], 1 }

</bundles_post_ra>
